<compile_context>
chip_gen: v7x
topology: tpu7x:2x2x1
jax: 0.10.0
libtpu: 0.0.40
codegen_flags: <defaults>
</compile_context>

<pallas_src>
import jax
import jax.numpy as jnp
from jax.experimental import pallas as pl
from jax.experimental.pallas import tpu as pltpu

HIDDEN = 256
_MAX_TILE = 2048      # per-tile rows; a few MiB of VMEM -> safe on v5e/v6e/v7x
_MIN_SPLIT = 1024     # above this, use >=2 tiles so v7x's two TCs both work


# ----------------------------------------------------------------------------
# Pallas kernel: fused 3-layer MLP for one batch tile
# ----------------------------------------------------------------------------
def _soft_q_kernel(xa_ref, w1_ref, b1_ref, w2_ref, b2_ref, w3_ref, b3_ref,
                   out_ref):
    bf16 = jnp.bfloat16

    xa = xa_ref[...]                                   # (tb, obs+act) bf16

    # fc1 + ReLU: single fused matmul over the concatenated input, f32 acc.
    h1 = jnp.dot(xa, w1_ref[...],
                 preferred_element_type=jnp.float32) + b1_ref[...]
    h1 = jnp.maximum(h1, 0.0)                          # (tb, 256) f32

    # fc2 + ReLU
    h2 = jnp.dot(h1.astype(bf16), w2_ref[...],
                 preferred_element_type=jnp.float32) + b2_ref[...]
    h2 = jnp.maximum(h2, 0.0)                          # (tb, 256) f32

    # fc3: output width 1 -> VPU multiply + XLU lane reduce (skips a 1-lane
    # MXU pass).  Result is laid out lane-dense, (1, tb), for unmasked stores.
    # NOTE(v5e): if VALU/vst is the saturating slot there, move this back onto
    # the idle MXU as a (256, 1) bf16 dot.
    w3_row = w3_ref[...].astype(jnp.float32)           # (1, 256)
    q_row = jnp.sum(h2 * w3_row, axis=-1).reshape(1, -1) + b3_ref[...]  # (1, tb)
    out_ref[...] = q_row.reshape(out_ref.shape).astype(out_ref.dtype)   # (1,1,tb)


# ----------------------------------------------------------------------------
# Wrapper: concat+cast inputs, pick tiling, call the kernel
# ----------------------------------------------------------------------------
def _round_up(n, m):
    return ((n + m - 1) // m) * m


def _choose_tiling(batch):
    """Return (tile_rows, num_tiles). Adaptive so padding waste stays small."""
    if batch < _MIN_SPLIT:
        return max(_round_up(batch, 8), 8), 1
    num_tiles = max(2, -(-batch // _MAX_TILE))          # >=2 tiles for megacore
    tile = _round_up(-(-batch // num_tiles), 8)
    return tile, num_tiles


def _soft_q_forward(x, a, params):
    """x: (B, obs_dim) f32, a: (B, act_dim) f32 -> q: (B, 1) f32."""
    w1, b1, w2, b2, w3, b3 = params
    B = x.shape[0]
    K = w1.shape[0]                                     # obs_dim + act_dim

    # Host-side concat is a trivial B x K copy; stream activations as bf16.
    xa = jnp.concatenate([x, a], axis=1).astype(jnp.bfloat16)   # (B, K)

    tb, nb = _choose_tiling(B)
    bp = tb * nb
    if bp != B:
        xa = jnp.pad(xa, ((0, bp - B), (0, 0)))

    const2d = lambda i: (0, 0)
    # Weights/biases never change block index -> keep a single VMEM buffer.
    wspec = lambda p: pl.BlockSpec(p.shape, const2d,
                                   pipeline_mode=pl.Buffered(1))

    grid_spec = pltpu.PrefetchScalarGridSpec(
        num_scalar_prefetch=0,
        grid=(nb,),
        in_specs=[
            pl.BlockSpec((tb, K), lambda i: (i, 0)),    # activation tile
            wspec(w1), wspec(b1),
            wspec(w2), wspec(b2),
            wspec(w3), wspec(b3),
        ],
        # Lane-dense output row per tile: (1, 1, tb).
        out_specs=pl.BlockSpec((1, 1, tb), lambda i: (i, 0, 0)),
    )

    flops = 2 * bp * (K * HIDDEN + HIDDEN * HIDDEN + HIDDEN)
    bytes_accessed = (xa.size * xa.dtype.itemsize
                      + sum(p.size * p.dtype.itemsize for p in params)
                      + bp * 4)
    cost = pl.CostEstimate(flops=flops, transcendentals=0,
                           bytes_accessed=bytes_accessed)

    q = pl.pallas_call(
        _soft_q_kernel,
        out_shape=jax.ShapeDtypeStruct((nb, 1, tb), jnp.float32),
        grid_spec=grid_spec,
        compiler_params=pltpu.CompilerParams(
            dimension_semantics=("parallel",),
            vmem_limit_bytes=32 * 1024 * 1024),
        cost_estimate=cost,
    )(xa, w1, b1, w2, b2, w3, b3)

    return q.reshape(bp, 1)[:B]


soft_q_forward = jax.jit(_soft_q_forward)


# ----------------------------------------------------------------------------
# Parameter init (mirrors nn.Linear's U(-1/sqrt(fan_in), 1/sqrt(fan_in)))
# ----------------------------------------------------------------------------
def init_params(key, obs_dim, act_dim, hidden=HIDDEN):
    """Weights stored (in_features, out_features), bf16; biases f32.
    fc3 weight kept as a (1, hidden) row for the VPU/XLU reduction."""
    def linear(key, fan_in, fan_out):
        kw, kb = jax.random.split(key)
        bound = float(fan_in) ** -0.5
        w = jax.random.uniform(kw, (fan_in, fan_out), jnp.float32, -bound, bound)
        b = jax.random.uniform(kb, (1, fan_out), jnp.float32, -bound, bound)
        return w, b

    k1, k2, k3 = jax.random.split(key, 3)
    w1, b1 = linear(k1, obs_dim + act_dim, hidden)
    w2, b2 = linear(k2, hidden, hidden)
    w3, b3 = linear(k3, hidden, 1)

    bf16 = jnp.bfloat16
    return (w1.astype(bf16),            # (obs+act, 256)
            b1,                         # (1, 256) f32
            w2.astype(bf16),            # (256, 256)
            b2,                         # (1, 256) f32
            w3.T.astype(bf16),          # (1, 256)
            b3)                         # (1, 1) f32


def _reference(x, a, params):
    """Plain-JAX reference with matching bf16-weight/input precision."""
    w1, b1, w2, b2, w3, b3 = params
    bf16 = jnp.bfloat16
    xa = jnp.concatenate([x, a], axis=1).astype(bf16)
    h1 = jnp.maximum(
        jnp.dot(xa, w1, preferred_element_type=jnp.float32) + b1, 0.0)
    h2 = jnp.maximum(
        jnp.dot(h1.astype(bf16), w2, preferred_element_type=jnp.float32) + b2,
        0.0)
    return jnp.sum(h2 * w3.astype(jnp.float32), axis=-1, keepdims=True) + b3


if __name__ == "__main__":
    # Small shapes consistent with a continuous-control env.
    obs_dim, act_dim = 16, 8

    key = jax.random.PRNGKey(0)
    _, _, kp = jax.random.split(key, 3)
    params = init_params(kp, obs_dim, act_dim)

    # batch=4 exercises the single-tile path; batch=1032 exercises the
    # multi-tile (2-core) path with an odd, non-tile-multiple size.
    for batch in (4, 1032):
        kx, ka = jax.random.split(jax.random.fold_in(key, batch))
        x = jax.random.normal(kx, (batch, obs_dim), jnp.float32)
        a = jax.random.normal(ka, (batch, act_dim), jnp.float32)

        q = soft_q_forward(x, a, params)
        jax.block_until_ready(q)

        ref = _reference(x, a, params)
        assert q.shape == (batch, 1), q.shape
        assert jnp.allclose(q, ref, atol=5e-3, rtol=5e-3), \
            f"mismatch vs JAX reference (batch={batch})"

    print("KERNEL_OK")
</pallas_src>

<mosaic_0001>
module attributes {stable_mosaic.version = 11 : i64} {
  func.func @_soft_q_kernel(%arg0: i32, %arg1: memref<8x24xbf16, #tpu.memory_space<vmem>>, %arg2: memref<24x256xbf16, #tpu.memory_space<vmem>>, %arg3: memref<1x256xf32, #tpu.memory_space<vmem>>, %arg4: memref<256x256xbf16, #tpu.memory_space<vmem>>, %arg5: memref<1x256xf32, #tpu.memory_space<vmem>>, %arg6: memref<1x256xbf16, #tpu.memory_space<vmem>>, %arg7: memref<1x1xf32, #tpu.memory_space<vmem>>, %arg8: memref<1x1x8xf32, #tpu.memory_space<vmem>>) attributes {dimension_semantics = [#tpu.dimension_semantics<parallel>], iteration_bounds = array<i64: 1>, scalar_prefetch = 0 : i64, scratch_operands = 0 : i64, tpu.core_type = #tpu.core_type<tc>, window_params = [{transform_indices = @transform_0, window_bounds = array<i64: 8, 24>}, {pipeline_mode = #tpu.pipeline_mode<synchronous>, transform_indices = @transform_1, window_bounds = array<i64: 24, 256>}, {pipeline_mode = #tpu.pipeline_mode<synchronous>, transform_indices = @transform_2, window_bounds = array<i64: 1, 256>}, {pipeline_mode = #tpu.pipeline_mode<synchronous>, transform_indices = @transform_3, window_bounds = array<i64: 256, 256>}, {pipeline_mode = #tpu.pipeline_mode<synchronous>, transform_indices = @transform_4, window_bounds = array<i64: 1, 256>}, {pipeline_mode = #tpu.pipeline_mode<synchronous>, transform_indices = @transform_5, window_bounds = array<i64: 1, 256>}, {pipeline_mode = #tpu.pipeline_mode<synchronous>, transform_indices = @transform_6, window_bounds = array<i64: 1, 1>}, {transform_indices = @transform_7, window_bounds = array<i64: 1, 1, 8>}]} {
    %c0 = arith.constant 0 : index
    %c0_0 = arith.constant 0 : index
    %0 = vector.load %arg1[%c0, %c0_0] : memref<8x24xbf16, #tpu.memory_space<vmem>>, vector<8x24xbf16>
    %c0_1 = arith.constant 0 : index
    %c0_2 = arith.constant 0 : index
    %1 = vector.load %arg2[%c0_1, %c0_2] : memref<24x256xbf16, #tpu.memory_space<vmem>>, vector<24x256xbf16>
    %cst = arith.constant dense<0.000000e+00> : vector<8x256xf32>
    %2 = tpu.matmul %0, %1, %cst {dimension_numbers = #tpu.dot_dimension_numbers<[1], [0], [0], [1], [0, 0, 1, 1], [], []>} : vector<8x24xbf16>, vector<24x256xbf16>, vector<8x256xf32> -> vector<8x256xf32>
    %c0_3 = arith.constant 0 : index
    %c0_4 = arith.constant 0 : index
    %3 = vector.load %arg3[%c0_3, %c0_4] : memref<1x256xf32, #tpu.memory_space<vmem>>, vector<1x256xf32>
    %4 = vector.broadcast %3 : vector<1x256xf32> to vector<8x256xf32>
    %5 = arith.addf %2, %4 : vector<8x256xf32>
    %cst_5 = arith.constant 0.000000e+00 : f32
    %6 = vector.broadcast %cst_5 : f32 to vector<8x256xf32>
    %7 = arith.maximumf %5, %6 : vector<8x256xf32>
    %8 = arith.truncf %7 : vector<8x256xf32> to vector<8x256xbf16>
    %c0_6 = arith.constant 0 : index
    %c0_7 = arith.constant 0 : index
    %9 = vector.load %arg4[%c0_6, %c0_7] : memref<256x256xbf16, #tpu.memory_space<vmem>>, vector<256x256xbf16>
    %cst_8 = arith.constant dense<0.000000e+00> : vector<8x256xf32>
    %10 = tpu.matmul %8, %9, %cst_8 {dimension_numbers = #tpu.dot_dimension_numbers<[1], [0], [0], [1], [0, 0, 1, 1], [], []>} : vector<8x256xbf16>, vector<256x256xbf16>, vector<8x256xf32> -> vector<8x256xf32>
    %c0_9 = arith.constant 0 : index
    %c0_10 = arith.constant 0 : index
    %11 = vector.load %arg5[%c0_9, %c0_10] : memref<1x256xf32, #tpu.memory_space<vmem>>, vector<1x256xf32>
    %12 = vector.broadcast %11 : vector<1x256xf32> to vector<8x256xf32>
    %13 = arith.addf %10, %12 : vector<8x256xf32>
    %cst_11 = arith.constant 0.000000e+00 : f32
    %14 = vector.broadcast %cst_11 : f32 to vector<8x256xf32>
    %15 = arith.maximumf %13, %14 : vector<8x256xf32>
    %c0_12 = arith.constant 0 : index
    %c0_13 = arith.constant 0 : index
    %16 = vector.load %arg6[%c0_12, %c0_13] : memref<1x256xbf16, #tpu.memory_space<vmem>>, vector<1x256xbf16>
    %17 = arith.extf %16 : vector<1x256xbf16> to vector<1x256xf32>
    %18 = vector.broadcast %17 : vector<1x256xf32> to vector<8x256xf32>
    %19 = arith.mulf %15, %18 : vector<8x256xf32>
    %cst_14 = arith.constant dense<0.000000e+00> : vector<8xf32>
    %20 = vector.multi_reduction <add>, %19, %cst_14 [1] : vector<8x256xf32> to vector<8xf32>
    %21 = vector.shape_cast %20 : vector<8xf32> to vector<1x8xf32>
    %c0_15 = arith.constant 0 : index
    %c0_16 = arith.constant 0 : index
    %22 = vector.load %arg7[%c0_15, %c0_16] : memref<1x1xf32, #tpu.memory_space<vmem>>, vector<1x1xf32>
    %23 = vector.broadcast %22 : vector<1x1xf32> to vector<1x8xf32>
    %24 = arith.addf %21, %23 : vector<1x8xf32>
    %25 = vector.shape_cast %24 : vector<1x8xf32> to vector<1x1x8xf32>
    %c0_17 = arith.constant 0 : index
    %c0_18 = arith.constant 0 : index
    %c0_19 = arith.constant 0 : index
    %26 = vector.load %arg8[%c0_17, %c0_18, %c0_19] : memref<1x1x8xf32, #tpu.memory_space<vmem>>, vector<1x1x8xf32>
    tpu.vector_store %arg8[%c0_17, %c0_18, %c0_19], %25 {strides = array<i32>} : memref<1x1x8xf32, #tpu.memory_space<vmem>>, vector<1x1x8xf32>,
    return
  }
  func.func @transform_0(%arg0: i32) -> (i32, i32) {
    %c0_i32 = arith.constant 0 : i32
    %c0_i32_0 = arith.constant 0 : i32
    return %arg0, %c0_i32 : i32, i32
  }
  func.func @transform_1(%arg0: i32) -> (i32, i32) {
    %c0_i32 = arith.constant 0 : i32
    %c0_i32_0 = arith.constant 0 : i32
    %c0_i32_1 = arith.constant 0 : i32
    return %c0_i32, %c0_i32_0 : i32, i32
  }
  func.func @transform_2(%arg0: i32) -> (i32, i32) {
    %c0_i32 = arith.constant 0 : i32
    %c0_i32_0 = arith.constant 0 : i32
    %c0_i32_1 = arith.constant 0 : i32
    return %c0_i32, %c0_i32_0 : i32, i32
  }
  func.func @transform_3(%arg0: i32) -> (i32, i32) {
    %c0_i32 = arith.constant 0 : i32
    %c0_i32_0 = arith.constant 0 : i32
    %c0_i32_1 = arith.constant 0 : i32
    return %c0_i32, %c0_i32_0 : i32, i32
  }
  func.func @transform_4(%arg0: i32) -> (i32, i32) {
    %c0_i32 = arith.constant 0 : i32
    %c0_i32_0 = arith.constant 0 : i32
    %c0_i32_1 = arith.constant 0 : i32
    return %c0_i32, %c0_i32_0 : i32, i32
  }
  func.func @transform_5(%arg0: i32) -> (i32, i32) {
    %c0_i32 = arith.constant 0 : i32
    %c0_i32_0 = arith.constant 0 : i32
    %c0_i32_1 = arith.constant 0 : i32
    return %c0_i32, %c0_i32_0 : i32, i32
  }
  func.func @transform_6(%arg0: i32) -> (i32, i32) {
    %c0_i32 = arith.constant 0 : i32
    %c0_i32_0 = arith.constant 0 : i32
    %c0_i32_1 = arith.constant 0 : i32
    return %c0_i32, %c0_i32_0 : i32, i32
  }
  func.func @transform_7(%arg0: i32) -> (i32, i32, i32) {
    %c0_i32 = arith.constant 0 : i32
    %c0_i32_0 = arith.constant 0 : i32
    %c0_i32_1 = arith.constant 0 : i32
    return %arg0, %c0_i32, %c0_i32_0 : i32, i32, i32
  }
}

</mosaic_0001>

<bundles_post_ra>
// kernel: _soft_q_forward.1
= control target key start
LH: loop header
LB: loop body
LE: loop exit
PB: predicated region body
PF: predicated region fallthrough
CT: control target
= control target key end

     0   :  { %s632_s0 = inlined_call_operand.vmem [shape: bf16[8,24], index: 0, kind: input, shape index: {}]   ;;  %s633_s1 = inlined_call_operand.vmem [shape: bf16[24,256], index: 1, kind: input, shape index: {}]   ;;  %s634_s2 = inlined_call_operand.vmem [shape: f32[1,256], index: 2, kind: input, shape index: {}]   ;;  %s635_s3 = inlined_call_operand.hbm [shape: bf16[256,256], index: 3, kind: input, shape index: {}]   ;;  %s636_s4 = inlined_call_operand.vmem [shape: f32[1,256], index: 4, kind: input, shape index: {}]   ;;  %s637_s5 = inlined_call_operand.vmem [shape: bf16[1,256], index: 5, kind: input, shape index: {}]   ;;  %s638_s6 = inlined_call_operand.<no memory space> [shape: f32[1,1], index: 6, kind: input, shape index: {}]   ;;  %s639_s7 = inlined_call_operand.vmem [shape: f32[1,1,8], index: 7, kind: output, shape index: {}]  }
   0x1   :  { %v12_v0 = vstv %s638_s6 }
   0x2   :  { %13 = vst [vmem:[#allocation2] sm:$0x1] %v12_v0 }
   0x3   :  { %14 = vsyncpa [#allocation4], 0  ;;  %s549_s26 = smov [#allocation3]   ;;  %s525_s30 = scalar_lea.hbm %s635_s3, 4096 }
   0x4   :  { %s26_s27 = sshll.u32 %s549_s26, 4  ;;  %p526_p0 = scmp.ne.s32.totalorder %s635_s3, %s525_s30  ;;  %s27_s27 = int_to_ptr.vmem [resolvable:$true] %s26_s27 }
   0x5   :  { %p529_p1 = scmp.lt.u32.totalorder %s525_s30, %s635_s3 }
   0x7   :  { %p531_p2 = pnand %p529_p1, %p526_p0 }
   0x9   :  { %534 = shalt.err (!%p531_p2)
}
   0xa   :  { %s535_s6 = scalar_lea.vmem %s27_s27, 4096  ;;  %p540_p4 = scmp.lt.s32.totalorder %s27_s27, %s27_s27 }
   0xb   :  { %p536_p3 = scmp.ne.s32.totalorder %s27_s27, %s535_s6  ;;  %p541_p5 = scmp.lt.s32.totalorder %s535_s6, %s535_s6 }
   0xd   :  { %p542_p6 = por %p541_p5, %p540_p4 }
   0xf   :  { %p543_p7 = pnand %p542_p6, %p536_p3 }
  0x11   :  { %546 = shalt.err (!%p543_p7)
}
  0x12   :  { %s550_s12 = smov 128   ;;  %s551_s13 = smov 8  }
  0x13   :  { %32 = dma.hbm_to_vmem [thread:$0]  %s635_s3, 4096, %s27_s27, [#allocation4], %s550_s12, %s550_s12, %s551_s13  }
  0x14   :  { %547 = dma.done.wait [#allocation4], 4096  }
  0x15   :  { %548 = vsyncadd [#allocation4], 4294963200  ;;  %v552_v1 = vmov 0   ;;  %v472_v2 = vld [vmem:[%s633_s1 + $0x4] ss:$8 sps:$4 sm:$0xff]   ;;  %v46_v4 = vld [vmem:[%s633_s1 + $0x10] sm:$0xff]  ;;  %v49_v41 = vlaneseq }
  0x16   :  { %117 = vmatprep.mubr.bf16.mxu0 %v552_v1  ;;  %471 = vset.pattern.permute.xlu0 %v552_v1  ;;  %v474_v3 = vld [vmem:[%s633_s1] ss:$8 sps:$4 sm:$0xff]   ;;  %vm78_vm0 = vcmask 1043456   ;;  %v432_v5 = vcombine.high %v46_v4, %v46_v4  ;;  %v431_v6 = vcombine.low %v46_v4, %v46_v4  ;;  %v482_v11 = vld [vmem:[#allocation3 + $0x10] ss:$8 sps:$4 sm:$0xff]   ;;  %vm74_vm1 = vcmask 195584  }
  0x17   :  { %85 = vmatprep.subr.bf16.mxu0 %v472_v2  ;;  %v477_v7 = vld [vmem:[#allocation3 + $0x4] ss:$8 sps:$4 sm:$0xff]   ;;  %v479_v8 = vld [vmem:[#allocation3] ss:$8 sps:$4 sm:$0xff]   ;;  %v480_v10 = vld [vmem:[#allocation3 + $0x14] ss:$8 sps:$4 sm:$0xff]  }
  0x18   :  { %86 = vmatpush1.bf16.msra.mxu0 %v474_v3  ;;  %v80_v9 = vsel %vm78_vm0, %v431_v6, 0  ;;  %334 = vmatprep.subr.bf16.mxu1 %v477_v7  ;;  %v483_v12 = vld [vmem:[#allocation3 + $0x24] ss:$8 sps:$4 sm:$0xff]   ;;  %v43_v13 = vld [vmem:[%s632_s0] sm:$0xf]  ;;  %v50_v42 = vshrl.u32 %v49_v41, 7 }
  0x19   :  { %433 = vmatprep.subr.msk.bf16.mxu0 %vm78_vm0, %v432_v5  ;;  %335 = vmatpush1.bf16.msra.mxu1 %v479_v8  ;;  %v485_v14 = vld [vmem:[#allocation3 + $0x20] ss:$8 sps:$4 sm:$0xff]   ;;  %v486_v15 = vld [vmem:[#allocation3 + $0x34] ss:$8 sps:$4 sm:$0xff]   ;;  %v488_v16 = vld [vmem:[#allocation3 + $0x30] ss:$8 sps:$4 sm:$0xff]  }
  0x1a   :  { %336 = vmatprep.subr.bf16.mxu1 %v480_v10  ;;  %v489_v17 = vld [vmem:[#allocation3 + $0x44] ss:$8 sps:$4 sm:$0xff]   ;;  %v491_v18 = vld [vmem:[#allocation3 + $0x40] ss:$8 sps:$4 sm:$0xff]   ;;  %v492_v19 = vld [vmem:[#allocation3 + $0x54] ss:$8 sps:$4 sm:$0xff]  }
  0x1b   :  { %v494_v20 = vld [vmem:[#allocation3 + $0x50] ss:$8 sps:$4 sm:$0xff]   ;;  %v495_v21 = vld [vmem:[#allocation3 + $0x64] ss:$8 sps:$4 sm:$0xff]   ;;  %v497_v22 = vld [vmem:[#allocation3 + $0x60] ss:$8 sps:$4 sm:$0xff]  }
  0x1c   :  { %88 = vmatpush1.bf16.msra.mxu0 %v80_v9  ;;  %v498_v23 = vld [vmem:[#allocation3 + $0x74] ss:$8 sps:$4 sm:$0xff]   ;;  %v500_v24 = vld [vmem:[#allocation3 + $0x70] ss:$8 sps:$4 sm:$0xff]   ;;  %v501_v25 = vld [vmem:[#allocation3 + $0x84] ss:$8 sps:$4 sm:$0xff]  }
  0x1d   :  { %337 = vmatpush1.bf16.msra.mxu1 %v482_v11  ;;  %v503_v26 = vld [vmem:[#allocation3 + $0x80] ss:$8 sps:$4 sm:$0xff]   ;;  %v504_v27 = vld [vmem:[#allocation3 + $0x94] ss:$8 sps:$4 sm:$0xff]   ;;  %v506_v28 = vld [vmem:[#allocation3 + $0x90] ss:$8 sps:$4 sm:$0xff]  }
  0x1e   :  { %338 = vmatprep.subr.bf16.mxu1 %v483_v12  ;;  %v507_v29 = vld [vmem:[#allocation3 + $0xa4] ss:$8 sps:$4 sm:$0xff]   ;;  %v509_v30 = vld [vmem:[#allocation3 + $0xa0] ss:$8 sps:$4 sm:$0xff]   ;;  %v510_v31 = vld [vmem:[#allocation3 + $0xb4] ss:$8 sps:$4 sm:$0xff]  }
  0x1f   :  { %434 = vmatmul.mubr.msk.bf16.vlgmr.msra.gmra.mrb[0].mxu0 %vm74_vm1, %v43_v13  ;;  %v512_v32 = vld [vmem:[#allocation3 + $0xb0] ss:$8 sps:$4 sm:$0xff]   ;;  %v513_v33 = vld [vmem:[#allocation3 + $0xc4] ss:$8 sps:$4 sm:$0xff]   ;;  %v515_v34 = vld [vmem:[#allocation3 + $0xc0] ss:$8 sps:$4 sm:$0xff]  }
  0x20   :  { %v516_v35 = vld [vmem:[#allocation3 + $0xd4] ss:$8 sps:$4 sm:$0xff]   ;;  %v518_v36 = vld [vmem:[#allocation3 + $0xd0] ss:$8 sps:$4 sm:$0xff]   ;;  %v519_v37 = vld [vmem:[#allocation3 + $0xe4] ss:$8 sps:$4 sm:$0xff]  }
  0x21   :  { %339 = vmatpush1.bf16.msra.mxu1 %v485_v14  ;;  %v521_v38 = vld [vmem:[#allocation3 + $0xe0] ss:$8 sps:$4 sm:$0xff]   ;;  %v522_v39 = vld [vmem:[#allocation3 + $0xf4] ss:$8 sps:$4 sm:$0xff]   ;;  %v524_v40 = vld [vmem:[#allocation3 + $0xf0] ss:$8 sps:$4 sm:$0xff]  }
  0x22   :  { %340 = vmatprep.subr.bf16.mxu1 %v486_v15  ;;  %v51_v43 = vsub.s32 0, %v50_v42  ;;  %v47_v44 = vld [vmem:[%s634_s2] sm:$0x3]  ;;  %v55_v45 = vsub.s32 1, %v50_v42  ;;  %v386_v61 = vsub.s32 2, %v50_v42  ;;  %vm422_vm2 = vcmask 57344  }
  0x23   :  { %v377_v58 = vld [vmem:[%s637_s5] sm:$0x3] }
  0x24   :  { %v52_v46 = vrot.slane %v47_v44, %v51_v43  ;;  %v56_v47 = vrot.slane %v47_v44, %v55_v45  ;;  %v378_v59 = vunpack.c.l.bf16 %v377_v58  ;;  %v162_v60 = vld [vmem:[%s636_s4] sm:$0x3] }
  0x25   :  { %341 = vmatpush1.bf16.msra.mxu1 %v488_v16  ;;  %v167_v62 = vrot.slane %v162_v60, %v51_v43  ;;  %v171_v0 = vrot.slane %v162_v60, %v55_v45  ;;  %v403_v15 = vld [vmem:[#allocation2] sm:$0x1] }
  0x26   :  { %342 = vmatprep.subr.bf16.mxu1 %v489_v17  ;;  %v383_v63 = vrot.slane %v378_v59, %v51_v43  ;;  %v387_v1 = vrot.slane %v378_v59, %v386_v61  ;;  %v416_v17 = vand.u32 127, %v49_v41 }
  0x28   :  { %v393_v5 = vrot.slane %v383_v63, %v51_v43  ;;  %v397_v8 = vrot.slane %v387_v1, %v51_v43 }
  0x29   :  { %343 = vmatpush1.bf16.msra.mxu1 %v491_v18 }
  0x2a   :  { %344 = vmatprep.subr.bf16.mxu1 %v492_v19  ;;  %v419_v19 = vsub.s32 %v416_v17, %v50_v42 }
  0x2d   :  { %345 = vmatpush1.bf16.msra.mxu1 %v494_v20 }
  0x2e   :  { %346 = vmatprep.subr.bf16.mxu1 %v495_v21 }
  0x31   :  { %347 = vmatpush1.bf16.msra.mxu1 %v497_v22 }
  0x32   :  { %348 = vmatprep.subr.bf16.mxu1 %v498_v23 }
  0x35   :  { %349 = vmatpush1.bf16.msra.mxu1 %v500_v24 }
  0x36   :  { %350 = vmatprep.subr.bf16.mxu1 %v501_v25 }
  0x39   :  { %351 = vmatpush1.bf16.msra.mxu1 %v503_v26 }
  0x3a   :  { %352 = vmatprep.subr.bf16.mxu1 %v504_v27 }
  0x3d   :  { %353 = vmatpush1.bf16.msra.mxu1 %v506_v28 }
  0x3e   :  { %354 = vmatprep.subr.bf16.mxu1 %v507_v29 }
  0x41   :  { %355 = vmatpush1.bf16.msra.mxu1 %v509_v30 }
  0x42   :  { %356 = vmatprep.subr.bf16.mxu1 %v510_v31 }
  0x45   :  { %357 = vmatpush1.bf16.msra.mxu1 %v512_v32 }
  0x46   :  { %358 = vmatprep.subr.bf16.mxu1 %v513_v33 }
  0x49   :  { %359 = vmatpush1.bf16.msra.mxu1 %v515_v34 }
  0x4a   :  { %360 = vmatprep.subr.bf16.mxu1 %v516_v35 }
  0x4d   :  { %361 = vmatpush1.bf16.msra.mxu1 %v518_v36 }
  0x4e   :  { %362 = vmatprep.subr.bf16.mxu1 %v519_v37 }
  0x51   :  { %363 = vmatpush1.bf16.msra.mxu1 %v521_v38 }
  0x52   :  { %364 = vmatprep.subr.bf16.mxu1 %v522_v39 }
  0x55   :  { %365 = vmatpush1.bf16.msra.mxu1 %v524_v40 }
  0xf2   :  { %v119_v48 = vpop.f32.mrb[0].mxu0 }
  0xf3   :  { %v120_v49 = vadd.f32 %v119_v48, %v52_v46  ;;  %v121_v50 = vpop.f32.mrb[1].mxu0 }
  0xf4   :  { %v122_v51 = vadd.f32 %v121_v50, %v56_v47  ;;  %v123_v52 = vpop.f32.mrb[2].mxu0 }
  0xf5   :  { %v126_v53 = vmax.f32 %v120_v49, 0.0  ;;  %v124_v54 = vpop.f32.mrb[3].mxu0 }
  0xf6   :  { %v127_v55 = vmax.f32 %v122_v51, 0.0 }
  0xf7   :  { %v128_v57 = vpack.c.bf16 %v126_v53, %v126_v53 }
  0xf8   :  { %v129_v56 = vpack.c.bf16 %v127_v55, %v127_v55 }
  0xfa   :  { %366 = vmatprep.mubr.bf16.mxu1 %v129_v56 }
  0xfb   :  { %367 = vmatmul.mubr.bf16.vlgmr.msra.gmra.mrb[0].mxu1 %v128_v57 }
 0x1ce   :  { %v368_v2 = vpop.f32.mrb[0].mxu1 }
 0x1cf   :  { %v369_v3 = vadd.f32 %v368_v2, %v167_v62  ;;  %v370_v4 = vpop.f32.mrb[1].mxu1 }
 0x1d0   :  { %v371_v6 = vadd.f32 %v370_v4, %v171_v0  ;;  %v372_v7 = vpop.f32.mrb[2].mxu1 }
 0x1d1   :  { %v375_v9 = vmax.f32 %v369_v3, 0.0  ;;  %v373_v10 = vpop.f32.mrb[3].mxu1 }
 0x1d2   :  { %v376_v11 = vmax.f32 %v371_v6, 0.0 }
 0x1d3   :  { %v398_v12 = vmul.f32 %v393_v5, %v375_v9 }
 0x1d4   :  { %v399_v13 = vmul.f32 %v397_v8, %v376_v11 }
 0x1d6   :  { %v400_v14 = vadd.f32 %v399_v13, %v398_v12 }
 0x1d8   :  { %401 = vadd.xlane.f32.xlu0 %v400_v14 }
 0x1ee   :  { %406 = vperm.xlu0 %471, %v403_v15  }
 0x265   :  { %v402_v16 = vpop.xlane.xlu0 %401 }
 0x26d   :  { %v407_v18 = vpop.permute.xlu0 %406 }
 0x26e   :  { %v412_v20 = vrot.slane %v407_v18, %v51_v43 }
 0x270   :  { %v413_v21 = vadd.f32 %v412_v20, %v402_v16 }
 0x272   :  { %v420_v22 = vrot.slane %v413_v21, %v419_v19 }
 0x274   :  { %423 = vst.msk [vmem:[%s639_s7] sm:$0x1] %vm422_vm2, %v420_v22 }
 0x275   :  { %428 = vsyncpa [#allocation4], 1 }

</bundles_post_ra>
